<compile_context>
chip_gen: v6e
topology: v6e:2x2x1
jax: 0.10.0
libtpu: 0.0.40
codegen_flags: <defaults>
</compile_context>

<pallas_src>
import jax
import jax.numpy as jnp
import numpy as np
from jax.experimental import pallas as pl
from jax.experimental.pallas import tpu as pltpu


# ----------------------------------------------------------------------------
# Fused kernel: encoder (K-tiled) -> VMEM emb scratch -> attention pool + head
# ----------------------------------------------------------------------------
def fused_kernel(x_ref, w_enc_ref, b_enc_ref,
                 w1_ref, b1_ref, w2_ref, b2_ref,
                 wh1_ref, bh1_ref, wh2_ref, bh2_ref,
                 o_ref, acc_ref, emb_ref):
    i = pl.program_id(0)              # row-tile index over n = B*F
    k = pl.program_id(1)              # reduction index over d_in
    ni = pl.num_programs(0)
    nk = pl.num_programs(1)
    tm = acc_ref.shape[0]

    # ---- surrogate encoder: x @ w_enc, K-tiled, f32 accumulate --------------
    @pl.when(k == 0)
    def _():
        acc_ref[...] = jnp.zeros_like(acc_ref)

    acc_ref[...] += jnp.dot(x_ref[...], w_enc_ref[...],
                            preferred_element_type=jnp.float32)

    @pl.when(k == nk - 1)
    def _():
        row0 = pl.multiple_of(i * tm, tm)
        emb_ref[pl.ds(row0, tm), :] = jnp.tanh(acc_ref[...] + b_enc_ref[...])

    # ---- temporal attention pooling + regression head on the last step ------
    @pl.when(jnp.logical_and(i == ni - 1, k == nk - 1))
    def _():
        emb = emb_ref[...]                                   # (n, H) f32
        n, Hd = emb.shape
        B = o_ref.shape[0]
        F = n // B

        # attention MLP as one full-width 2-D matmul: (n, H) @ (H, Kp)
        h = jnp.tanh(jnp.dot(emb, w1_ref[...],
                             preferred_element_type=jnp.float32) + b1_ref[...])
        # second attention linear (out dim 1): elementwise mul + lane reduce
        logits = (jnp.sum(h * w2_ref[...], axis=-1, keepdims=True)
                  + b2_ref[0, 0])                            # (n, 1)

        # softmax over frames (axis=1 of (B, F, 1)); sublane-only reshape.
        lg = logits.reshape(B, F, 1)
        m = jnp.max(lg, axis=1, keepdims=True)
        e = jnp.exp(lg - m)
        attn = e * pl.reciprocal(jnp.sum(e, axis=1, keepdims=True), approx=True)

        pooled = jnp.sum(emb.reshape(B, F, Hd) * attn, axis=1)        # (B, H)

        # regression head (Dropout == identity at inference)
        r = jnp.maximum(jnp.dot(pooled, wh1_ref[...],
                                preferred_element_type=jnp.float32)
                        + bh1_ref[...], 0.0)                          # (B, 256)
        z = (jnp.sum(r * wh2_ref[...], axis=-1, keepdims=True)
             + bh2_ref[0, 0])                                         # (B, 1)
        s = pl.reciprocal(1.0 + jnp.exp(-z), approx=True) * 10.0      # sigmoid*10
        o_ref[...] = jnp.broadcast_to(s, o_ref.shape)                 # lane-dense


# ----------------------------------------------------------------------------
# Wrapper
# ----------------------------------------------------------------------------
def video_score_predictor(frames, params):
    B, F, C, Hpx, Wpx = frames.shape
    d_in = C * Hpx * Wpx
    hidden = params['w_enc'].shape[1]
    n = B * F

    # bf16 inputs for the encoder MXU matmul (accumulation stays f32 in-kernel).
    x = frames.reshape(n, d_in).astype(jnp.bfloat16)
    w_enc = params['w_enc'].astype(jnp.bfloat16)

    # Zero-pad the attention bottleneck K = hidden//2 to a lane-dense width.
    K = params['w_attn1'].shape[1]
    Kp = ((K + 127) // 128) * 128
    w_a1 = jnp.pad(params['w_attn1'], ((0, 0), (0, Kp - K)))
    b_a1 = jnp.pad(params['b_attn1'], ((0, 0), (0, Kp - K)))
    w_a2 = jnp.pad(params['w_attn2'], ((0, 0), (0, Kp - K)))

    # Large row tiles feed the MXU full-width; d_in is K-tiled so the resident
    # encoder-weight block stays bounded (needed for real CLIP d_in on v7x's
    # 64 MiB VMEM and v6e's 32 MiB default scoped limit).
    tm = min(n, 256)
    tk = min(d_in, 1024)
    assert n % tm == 0 and d_in % tk == 0, "demo shapes must tile evenly"
    # TODO(synk): production shapes need cdiv grids + masking/padding here.

    grid = (n // tm, d_in // tk)
    smem = pl.BlockSpec(memory_space=pltpu.MemorySpace.SMEM)

    out_padded = pl.pallas_call(
        fused_kernel,
        out_shape=jax.ShapeDtypeStruct((B, 128), jnp.float32),
        grid_spec=pltpu.PrefetchScalarGridSpec(
            num_scalar_prefetch=0,
            grid=grid,
            in_specs=[
                pl.BlockSpec((tm, tk), lambda i, k: (i, k)),        # x (bf16)
                pl.BlockSpec((tk, hidden), lambda i, k: (k, 0)),    # w_enc (bf16)
                pl.BlockSpec((1, hidden), lambda i, k: (0, 0)),     # b_enc
                pl.BlockSpec((hidden, Kp), lambda i, k: (0, 0)),    # w_attn1
                pl.BlockSpec((1, Kp), lambda i, k: (0, 0)),         # b_attn1
                pl.BlockSpec((1, Kp), lambda i, k: (0, 0)),         # w_attn2
                smem,                                               # b_attn2 scalar
                pl.BlockSpec((hidden, 256), lambda i, k: (0, 0)),   # w_head1
                pl.BlockSpec((1, 256), lambda i, k: (0, 0)),        # b_head1
                pl.BlockSpec((1, 256), lambda i, k: (0, 0)),        # w_head2
                smem,                                               # b_head2 scalar
            ],
            out_specs=pl.BlockSpec((B, 128), lambda i, k: (0, 0)),
            scratch_shapes=[
                pltpu.VMEM((tm, hidden), jnp.float32),   # encoder accumulator
                pltpu.VMEM((n, hidden), jnp.float32),    # frame embeddings
            ]),
        # Both grid axes carry state (accumulator / resident emb & output),
        # so they must be "arbitrary".
        # TODO(synk): for large B*F on v7x, un-fuse the pool/head so the row
        # axis can be "parallel" across the 2 TensorCores.
        compiler_params=pltpu.CompilerParams(
            dimension_semantics=("arbitrary", "arbitrary"),
            vmem_limit_bytes=64 * 1024 * 1024),
    )(x, w_enc, params['b_enc'],
      w_a1, b_a1, w_a2, params['b_attn2'],
      params['w_head1'], params['b_head1'],
      params['w_head2'], params['b_head2'])

    return out_padded[:, 0]                                  # squeeze(-1)


# ----------------------------------------------------------------------------
# Pure-JAX reference (matches the kernel's bf16 encoder-matmul contract)
# ----------------------------------------------------------------------------
def reference(frames, params):
    B, F = frames.shape[:2]
    x = frames.reshape(B * F, -1)
    emb = jnp.tanh(
        jnp.dot(x.astype(jnp.bfloat16), params['w_enc'].astype(jnp.bfloat16),
                preferred_element_type=jnp.float32) + params['b_enc'])
    emb = emb.reshape(B, F, -1)
    h = jnp.tanh(emb @ params['w_attn1'] + params['b_attn1'])
    logits = jnp.sum(h * params['w_attn2'], -1, keepdims=True) + params['b_attn2'][0, 0]
    attn = jax.nn.softmax(logits, axis=1)
    pooled = jnp.sum(emb * attn, axis=1)
    r = jax.nn.relu(pooled @ params['w_head1'] + params['b_head1'])
    s = jax.nn.sigmoid(jnp.sum(r * params['w_head2'], -1) + params['b_head2'][0, 0])
    return s * 10.0


def init_params(key, d_in, hidden):
    ks = jax.random.split(key, 10)

    def lin(kw, kb, fan_in, shape_w, shape_b):
        lim = 1.0 / np.sqrt(fan_in)
        w = jax.random.uniform(kw, shape_w, jnp.float32, -lim, lim)
        b = jax.random.uniform(kb, shape_b, jnp.float32, -lim, lim)
        return w, b

    w_enc, b_enc = lin(ks[0], ks[1], d_in, (d_in, hidden), (1, hidden))
    w_a1, b_a1 = lin(ks[2], ks[3], hidden, (hidden, hidden // 2), (1, hidden // 2))
    w_a2, b_a2 = lin(ks[4], ks[5], hidden // 2, (1, hidden // 2), (1, 1))
    w_h1, b_h1 = lin(ks[6], ks[7], hidden, (hidden, 256), (1, 256))
    w_h2, b_h2 = lin(ks[8], ks[9], 256, (1, 256), (1, 1))
    return dict(w_enc=w_enc, b_enc=b_enc,
                w_attn1=w_a1, b_attn1=b_a1,
                w_attn2=w_a2, b_attn2=b_a2,
                w_head1=w_h1, b_head1=b_h1,
                w_head2=w_h2, b_head2=b_h2)


if __name__ == "__main__":
    key = jax.random.PRNGKey(0)
    k_frames, k_params = jax.random.split(key)

    # Small shapes consistent with forward(): [batch, num_frames, C, H, W]
    B, F, C, Hpx, Wpx = 2, 8, 3, 16, 16
    hidden = 128                                   # surrogate hidden_size
    frames = jax.random.normal(k_frames, (B, F, C, Hpx, Wpx), jnp.float32)
    params = init_params(k_params, C * Hpx * Wpx, hidden)

    scores = jax.block_until_ready(video_score_predictor(frames, params))
    ref = jax.block_until_ready(reference(frames, params))

    assert scores.shape == (B,), scores.shape
    np.testing.assert_allclose(np.asarray(scores), np.asarray(ref),
                               atol=5e-2, rtol=2e-2)
    print("KERNEL_OK")
</pallas_src>

<mosaic_0001>
module attributes {stable_mosaic.version = 11 : i64} {
  func.func @fused_kernel(%arg0: i32, %arg1: i32, %arg2: memref<16x768xbf16, #tpu.memory_space<vmem>>, %arg3: memref<768x128xbf16, #tpu.memory_space<vmem>>, %arg4: memref<1x128xf32, #tpu.memory_space<vmem>>, %arg5: memref<128x128xf32, #tpu.memory_space<vmem>>, %arg6: memref<1x128xf32, #tpu.memory_space<vmem>>, %arg7: memref<1x128xf32, #tpu.memory_space<vmem>>, %arg8: memref<1x1xf32, #tpu.memory_space<smem>>, %arg9: memref<128x256xf32, #tpu.memory_space<vmem>>, %arg10: memref<1x256xf32, #tpu.memory_space<vmem>>, %arg11: memref<1x256xf32, #tpu.memory_space<vmem>>, %arg12: memref<1x1xf32, #tpu.memory_space<smem>>, %arg13: memref<2x128xf32, #tpu.memory_space<vmem>>, %arg14: memref<16x128xf32, #tpu.memory_space<vmem>>, %arg15: memref<16x128xf32, #tpu.memory_space<vmem>>) attributes {dimension_semantics = [#tpu.dimension_semantics<arbitrary>, #tpu.dimension_semantics<arbitrary>], iteration_bounds = array<i64: 1, 1>, scalar_prefetch = 0 : i64, scratch_operands = 2 : i64, tpu.core_type = #tpu.core_type<tc>, window_params = [{transform_indices = @transform_0, window_bounds = array<i64: 16, 768>}, {transform_indices = @transform_1, window_bounds = array<i64: 768, 128>}, {pipeline_mode = #tpu.pipeline_mode<synchronous>, transform_indices = @transform_2, window_bounds = array<i64: 1, 128>}, {pipeline_mode = #tpu.pipeline_mode<synchronous>, transform_indices = @transform_3, window_bounds = array<i64: 128, 128>}, {pipeline_mode = #tpu.pipeline_mode<synchronous>, transform_indices = @transform_4, window_bounds = array<i64: 1, 128>}, {pipeline_mode = #tpu.pipeline_mode<synchronous>, transform_indices = @transform_5, window_bounds = array<i64: 1, 128>}, {transform_indices = @transform_6, window_bounds = array<i64: 1, 1>}, {pipeline_mode = #tpu.pipeline_mode<synchronous>, transform_indices = @transform_7, window_bounds = array<i64: 128, 256>}, {pipeline_mode = #tpu.pipeline_mode<synchronous>, transform_indices = @transform_8, window_bounds = array<i64: 1, 256>}, {pipeline_mode = #tpu.pipeline_mode<synchronous>, transform_indices = @transform_9, window_bounds = array<i64: 1, 256>}, {transform_indices = @transform_10, window_bounds = array<i64: 1, 1>}, {pipeline_mode = #tpu.pipeline_mode<synchronous>, transform_indices = @transform_11, window_bounds = array<i64: 2, 128>}]} {
    %c0_i32 = arith.constant 0 : i32
    %0 = arith.cmpi eq, %arg1, %c0_i32 : i32
    %1 = arith.extui %0 : i1 to i32
    %c0_i32_0 = arith.constant 0 : i32
    %2 = arith.cmpi ne, %1, %c0_i32_0 : i32
    scf.if %2 {
      %cst_13 = arith.constant 0.000000e+00 : f32
      %17 = vector.broadcast %cst_13 : f32 to vector<16x128xf32>
      %c0_14 = arith.constant 0 : index
      %c0_15 = arith.constant 0 : index
      %18 = vector.load %arg14[%c0_14, %c0_15] : memref<16x128xf32, #tpu.memory_space<vmem>>, vector<16x128xf32>
      tpu.vector_store %arg14[%c0_14, %c0_15], %17 {strides = array<i32>} : memref<16x128xf32, #tpu.memory_space<vmem>>, vector<16x128xf32>,
    } else {
    }
    %c0 = arith.constant 0 : index
    %c0_1 = arith.constant 0 : index
    %3 = vector.load %arg14[%c0, %c0_1] : memref<16x128xf32, #tpu.memory_space<vmem>>, vector<16x128xf32>
    %c0_2 = arith.constant 0 : index
    %c0_3 = arith.constant 0 : index
    %4 = vector.load %arg2[%c0_2, %c0_3] : memref<16x768xbf16, #tpu.memory_space<vmem>>, vector<16x768xbf16>
    %c0_4 = arith.constant 0 : index
    %c0_5 = arith.constant 0 : index
    %5 = vector.load %arg3[%c0_4, %c0_5] : memref<768x128xbf16, #tpu.memory_space<vmem>>, vector<768x128xbf16>
    %cst = arith.constant dense<0.000000e+00> : vector<16x128xf32>
    %6 = tpu.matmul %4, %5, %cst {dimension_numbers = #tpu.dot_dimension_numbers<[1], [0], [0], [1], [0, 0, 1, 1], [], []>} : vector<16x768xbf16>, vector<768x128xbf16>, vector<16x128xf32> -> vector<16x128xf32>
    %7 = arith.addf %3, %6 : vector<16x128xf32>
    %c0_6 = arith.constant 0 : index
    %c0_7 = arith.constant 0 : index
    %8 = vector.load %arg14[%c0_6, %c0_7] : memref<16x128xf32, #tpu.memory_space<vmem>>, vector<16x128xf32>
    tpu.vector_store %arg14[%c0_6, %c0_7], %7 {strides = array<i32>} : memref<16x128xf32, #tpu.memory_space<vmem>>, vector<16x128xf32>,
    %c0_i32_8 = arith.constant 0 : i32
    %9 = arith.cmpi eq, %arg1, %c0_i32_8 : i32
    %10 = arith.extui %9 : i1 to i32
    %c0_i32_9 = arith.constant 0 : i32
    %11 = arith.cmpi ne, %10, %c0_i32_9 : i32
    scf.if %11 {
      %c16_i32 = arith.constant 16 : i32
      %17 = arith.muli %arg0, %c16_i32 : i32
      %18 = tpu.assume_multiple %17, 16 : i32
      %c0_13 = arith.constant 0 : index
      %c0_14 = arith.constant 0 : index
      %19 = vector.load %arg14[%c0_13, %c0_14] : memref<16x128xf32, #tpu.memory_space<vmem>>, vector<16x128xf32>
      %c0_15 = arith.constant 0 : index
      %c0_16 = arith.constant 0 : index
      %20 = vector.load %arg4[%c0_15, %c0_16] : memref<1x128xf32, #tpu.memory_space<vmem>>, vector<1x128xf32>
      %21 = vector.broadcast %20 : vector<1x128xf32> to vector<16x128xf32>
      %22 = arith.addf %19, %21 : vector<16x128xf32>
      %23 = math.tanh %22 : vector<16x128xf32>
      %24 = arith.index_cast %18 : i32 to index
      %c0_17 = arith.constant 0 : index
      %25 = vector.load %arg15[%24, %c0_17] : memref<16x128xf32, #tpu.memory_space<vmem>>, vector<16x128xf32>
      tpu.vector_store %arg15[%24, %c0_17], %23 {strides = array<i32>} : memref<16x128xf32, #tpu.memory_space<vmem>>, vector<16x128xf32>,
    } else {
    }
    %c0_i32_10 = arith.constant 0 : i32
    %12 = arith.cmpi eq, %arg0, %c0_i32_10 : i32
    %c0_i32_11 = arith.constant 0 : i32
    %13 = arith.cmpi eq, %arg1, %c0_i32_11 : i32
    %14 = arith.andi %12, %13 : i1
    %15 = arith.extui %14 : i1 to i32
    %c0_i32_12 = arith.constant 0 : i32
    %16 = arith.cmpi ne, %15, %c0_i32_12 : i32
    scf.if %16 {
      %c0_13 = arith.constant 0 : index
      %c0_14 = arith.constant 0 : index
      %17 = vector.load %arg15[%c0_13, %c0_14] : memref<16x128xf32, #tpu.memory_space<vmem>>, vector<16x128xf32>
      %c0_15 = arith.constant 0 : index
      %c0_16 = arith.constant 0 : index
      %18 = vector.load %arg5[%c0_15, %c0_16] : memref<128x128xf32, #tpu.memory_space<vmem>>, vector<128x128xf32>
      %cst_17 = arith.constant dense<0.000000e+00> : vector<16x128xf32>
      %19 = tpu.matmul %17, %18, %cst_17 {dimension_numbers = #tpu.dot_dimension_numbers<[1], [0], [0], [1], [0, 0, 1, 1], [], []>} : vector<16x128xf32>, vector<128x128xf32>, vector<16x128xf32> -> vector<16x128xf32>
      %c0_18 = arith.constant 0 : index
      %c0_19 = arith.constant 0 : index
      %20 = vector.load %arg6[%c0_18, %c0_19] : memref<1x128xf32, #tpu.memory_space<vmem>>, vector<1x128xf32>
      %21 = vector.broadcast %20 : vector<1x128xf32> to vector<16x128xf32>
      %22 = arith.addf %19, %21 : vector<16x128xf32>
      %23 = math.tanh %22 : vector<16x128xf32>
      %c0_20 = arith.constant 0 : index
      %c0_21 = arith.constant 0 : index
      %24 = vector.load %arg7[%c0_20, %c0_21] : memref<1x128xf32, #tpu.memory_space<vmem>>, vector<1x128xf32>
      %25 = vector.broadcast %24 : vector<1x128xf32> to vector<16x128xf32>
      %26 = arith.mulf %23, %25 : vector<16x128xf32>
      %cst_22 = arith.constant dense<0.000000e+00> : vector<16xf32>
      %27 = vector.multi_reduction <add>, %26, %cst_22 [1] : vector<16x128xf32> to vector<16xf32>
      %28 = vector.shape_cast %27 : vector<16xf32> to vector<16x1xf32>
      %c0_23 = arith.constant 0 : index
      %c0_24 = arith.constant 0 : index
      %29 = memref.load %arg8[%c0_23, %c0_24] : memref<1x1xf32, #tpu.memory_space<smem>>
      %30 = vector.broadcast %29 : f32 to vector<16x1xf32>
      %31 = arith.addf %28, %30 : vector<16x1xf32>
      %32 = vector.shape_cast %31 : vector<16x1xf32> to vector<2x8x1xf32>
      %cst_25 = arith.constant dense<0xFF800000> : vector<2x1xf32>
      %33 = vector.multi_reduction <maximumf>, %32, %cst_25 [1] : vector<2x8x1xf32> to vector<2x1xf32>
      %34 = vector.shape_cast %33 : vector<2x1xf32> to vector<2x1x1xf32>
      %35 = vector.broadcast %34 : vector<2x1x1xf32> to vector<2x8x1xf32>
      %36 = arith.subf %32, %35 : vector<2x8x1xf32>
      %37 = math.exp %36 : vector<2x8x1xf32>
      %cst_26 = arith.constant dense<0.000000e+00> : vector<2x1xf32>
      %38 = vector.multi_reduction <add>, %37, %cst_26 [1] : vector<2x8x1xf32> to vector<2x1xf32>
      %39 = vector.shape_cast %38 : vector<2x1xf32> to vector<2x1x1xf32>
      %40 = tpu.reciprocal %39 {approx = true} : vector<2x1x1xf32> -> vector<2x1x1xf32>
      %41 = vector.broadcast %40 : vector<2x1x1xf32> to vector<2x8x1xf32>
      %42 = arith.mulf %37, %41 : vector<2x8x1xf32>
      %43 = vector.shape_cast %17 : vector<16x128xf32> to vector<2x8x128xf32>
      %44 = vector.broadcast %42 : vector<2x8x1xf32> to vector<2x8x128xf32>
      %45 = arith.mulf %43, %44 : vector<2x8x128xf32>
      %cst_27 = arith.constant dense<0.000000e+00> : vector<2x128xf32>
      %46 = vector.multi_reduction <add>, %45, %cst_27 [1] : vector<2x8x128xf32> to vector<2x128xf32>
      %c0_28 = arith.constant 0 : index
      %c0_29 = arith.constant 0 : index
      %47 = vector.load %arg9[%c0_28, %c0_29] : memref<128x256xf32, #tpu.memory_space<vmem>>, vector<128x256xf32>
      %cst_30 = arith.constant dense<0.000000e+00> : vector<2x256xf32>
      %48 = tpu.matmul %46, %47, %cst_30 {dimension_numbers = #tpu.dot_dimension_numbers<[1], [0], [0], [1], [0, 0, 1, 1], [], []>} : vector<2x128xf32>, vector<128x256xf32>, vector<2x256xf32> -> vector<2x256xf32>
      %c0_31 = arith.constant 0 : index
      %c0_32 = arith.constant 0 : index
      %49 = vector.load %arg10[%c0_31, %c0_32] : memref<1x256xf32, #tpu.memory_space<vmem>>, vector<1x256xf32>
      %50 = vector.broadcast %49 : vector<1x256xf32> to vector<2x256xf32>
      %51 = arith.addf %48, %50 : vector<2x256xf32>
      %cst_33 = arith.constant 0.000000e+00 : f32
      %52 = vector.broadcast %cst_33 : f32 to vector<2x256xf32>
      %53 = arith.maximumf %51, %52 : vector<2x256xf32>
      %c0_34 = arith.constant 0 : index
      %c0_35 = arith.constant 0 : index
      %54 = vector.load %arg11[%c0_34, %c0_35] : memref<1x256xf32, #tpu.memory_space<vmem>>, vector<1x256xf32>
      %55 = vector.broadcast %54 : vector<1x256xf32> to vector<2x256xf32>
      %56 = arith.mulf %53, %55 : vector<2x256xf32>
      %cst_36 = arith.constant dense<0.000000e+00> : vector<2xf32>
      %57 = vector.multi_reduction <add>, %56, %cst_36 [1] : vector<2x256xf32> to vector<2xf32>
      %58 = vector.shape_cast %57 : vector<2xf32> to vector<2x1xf32>
      %c0_37 = arith.constant 0 : index
      %c0_38 = arith.constant 0 : index
      %59 = memref.load %arg12[%c0_37, %c0_38] : memref<1x1xf32, #tpu.memory_space<smem>>
      %60 = vector.broadcast %59 : f32 to vector<2x1xf32>
      %61 = arith.addf %58, %60 : vector<2x1xf32>
      %cst_39 = arith.constant 0.000000e+00 : f32
      %62 = vector.broadcast %cst_39 : f32 to vector<2x1xf32>
      %63 = arith.subf %62, %61 : vector<2x1xf32>
      %64 = math.exp %63 : vector<2x1xf32>
      %cst_40 = arith.constant 1.000000e+00 : f32
      %65 = vector.broadcast %cst_40 : f32 to vector<2x1xf32>
      %66 = arith.addf %65, %64 : vector<2x1xf32>
      %67 = tpu.reciprocal %66 {approx = true} : vector<2x1xf32> -> vector<2x1xf32>
      %cst_41 = arith.constant 1.000000e+01 : f32
      %68 = vector.broadcast %cst_41 : f32 to vector<2x1xf32>
      %69 = arith.mulf %67, %68 : vector<2x1xf32>
      %70 = vector.shape_cast %69 : vector<2x1xf32> to vector<2x1xf32>
      %71 = vector.broadcast %70 : vector<2x1xf32> to vector<2x128xf32>
      %c0_42 = arith.constant 0 : index
      %c0_43 = arith.constant 0 : index
      %72 = vector.load %arg13[%c0_42, %c0_43] : memref<2x128xf32, #tpu.memory_space<vmem>>, vector<2x128xf32>
      tpu.vector_store %arg13[%c0_42, %c0_43], %71 {strides = array<i32>} : memref<2x128xf32, #tpu.memory_space<vmem>>, vector<2x128xf32>,
    } else {
    }
    return
  }
  func.func @transform_0(%arg0: i32, %arg1: i32) -> (i32, i32) {
    %c0_i32 = arith.constant 0 : i32
    return %arg0, %arg1 : i32, i32
  }
  func.func @transform_1(%arg0: i32, %arg1: i32) -> (i32, i32) {
    %c0_i32 = arith.constant 0 : i32
    %c0_i32_0 = arith.constant 0 : i32
    return %arg1, %c0_i32 : i32, i32
  }
  func.func @transform_2(%arg0: i32, %arg1: i32) -> (i32, i32) {
    %c0_i32 = arith.constant 0 : i32
    %c0_i32_0 = arith.constant 0 : i32
    %c0_i32_1 = arith.constant 0 : i32
    return %c0_i32, %c0_i32_0 : i32, i32
  }
  func.func @transform_3(%arg0: i32, %arg1: i32) -> (i32, i32) {
    %c0_i32 = arith.constant 0 : i32
    %c0_i32_0 = arith.constant 0 : i32
    %c0_i32_1 = arith.constant 0 : i32
    return %c0_i32, %c0_i32_0 : i32, i32
  }
  func.func @transform_4(%arg0: i32, %arg1: i32) -> (i32, i32) {
    %c0_i32 = arith.constant 0 : i32
    %c0_i32_0 = arith.constant 0 : i32
    %c0_i32_1 = arith.constant 0 : i32
    return %c0_i32, %c0_i32_0 : i32, i32
  }
  func.func @transform_5(%arg0: i32, %arg1: i32) -> (i32, i32) {
    %c0_i32 = arith.constant 0 : i32
    %c0_i32_0 = arith.constant 0 : i32
    %c0_i32_1 = arith.constant 0 : i32
    return %c0_i32, %c0_i32_0 : i32, i32
  }
  func.func @transform_6(%arg0: i32, %arg1: i32) -> (i32, i32) {
    %c0_i32 = arith.constant 0 : i32
    %c0_i32_0 = arith.constant 0 : i32
    %c0_i32_1 = arith.constant 0 : i32
    return %c0_i32, %c0_i32_0 : i32, i32
  }
  func.func @transform_7(%arg0: i32, %arg1: i32) -> (i32, i32) {
    %c0_i32 = arith.constant 0 : i32
    %c0_i32_0 = arith.constant 0 : i32
    %c0_i32_1 = arith.constant 0 : i32
    return %c0_i32, %c0_i32_0 : i32, i32
  }
  func.func @transform_8(%arg0: i32, %arg1: i32) -> (i32, i32) {
    %c0_i32 = arith.constant 0 : i32
    %c0_i32_0 = arith.constant 0 : i32
    %c0_i32_1 = arith.constant 0 : i32
    return %c0_i32, %c0_i32_0 : i32, i32
  }
  func.func @transform_9(%arg0: i32, %arg1: i32) -> (i32, i32) {
    %c0_i32 = arith.constant 0 : i32
    %c0_i32_0 = arith.constant 0 : i32
    %c0_i32_1 = arith.constant 0 : i32
    return %c0_i32, %c0_i32_0 : i32, i32
  }
  func.func @transform_10(%arg0: i32, %arg1: i32) -> (i32, i32) {
    %c0_i32 = arith.constant 0 : i32
    %c0_i32_0 = arith.constant 0 : i32
    %c0_i32_1 = arith.constant 0 : i32
    return %c0_i32, %c0_i32_0 : i32, i32
  }
  func.func @transform_11(%arg0: i32, %arg1: i32) -> (i32, i32) {
    %c0_i32 = arith.constant 0 : i32
    %c0_i32_0 = arith.constant 0 : i32
    %c0_i32_1 = arith.constant 0 : i32
    return %c0_i32, %c0_i32_0 : i32, i32
  }
}

</mosaic_0001>

<bundles_post_ra>
// kernel: tpu_custom_call.1
= control target key start
LH: loop header
LB: loop body
LE: loop exit
PB: predicated region body
PF: predicated region fallthrough
CT: control target
= control target key end

     0   :  { %18 = vsyncpa [#allocation7], 0  ;;  %s1506_s0 = inlined_call_operand.hbm [shape: bf16[16,768], index: 0, kind: input, shape index: {}]   ;;  %s1507_s1 = inlined_call_operand.hbm [shape: bf16[768,128], index: 1, kind: input, shape index: {}]   ;;  %s1508_s2 = inlined_call_operand.vmem [shape: f32[1,128], index: 2, kind: input, shape index: {}]   ;;  %s1509_s3 = inlined_call_operand.hbm [shape: f32[128,128], index: 3, kind: input, shape index: {}]   ;;  %s1510_s4 = inlined_call_operand.vmem [shape: f32[1,128], index: 4, kind: input, shape index: {}]   ;;  %s1511_s5 = inlined_call_operand.vmem [shape: f32[1,128], index: 5, kind: input, shape index: {}]   ;;  %s1512_s6 = inlined_call_operand.<no memory space> [shape: f32[1,1], index: 6, kind: input, shape index: {}]   ;;  %s1513_s7 = inlined_call_operand.hbm [shape: f32[128,256], index: 7, kind: input, shape index: {}]   ;;  %s1514_s8 = inlined_call_operand.vmem [shape: f32[1,256], index: 8, kind: input, shape index: {}]   ;;  %s1515_s9 = inlined_call_operand.vmem [shape: f32[1,256], index: 9, kind: input, shape index: {}]   ;;  %s1516_s10 = inlined_call_operand.<no memory space> [shape: f32[1,1], index: 10, kind: input, shape index: {}]   ;;  %s1517_s11 = inlined_call_operand.hbm [shape: f32[2,128], index: 11, kind: output, shape index: {}]  }
   0x1   :  { %19 = vsyncpa [#allocation10], 0 }
   0x2   :  { %20 = vsyncpa [#allocation13], 0 }
   0x3   :  { %21 = vsyncpa [#allocation8], 0  ;;  %s1388_s17 = smov [#allocation9]  }
   0x4   :  { %s39_s18 = sshll.u32 %s1388_s17, 4  ;;  %s40_s18 = int_to_ptr.vmem [resolvable:$true] %s39_s18 }
   0x5   :  { %s1288_s19 = scalar_lea.vmem %s40_s18, 6144  ;;  %p1293_p1 = scmp.lt.s32.totalorder %s40_s18, %s40_s18 }
   0x6   :  { %p1289_p0 = scmp.ne.s32.totalorder %s40_s18, %s1288_s19  ;;  %p1294_p2 = scmp.lt.s32.totalorder %s1288_s19, %s1288_s19 }
   0x8   :  { %p1295_p3 = por %p1294_p2, %p1293_p1 }
   0xa   :  { %p1296_p4 = pnand %p1295_p3, %p1289_p0 }
   0xc   :  { %1299 = shalt.err (!%p1296_p4)
}
   0xd   :  { %s1389_s20 = smov 64   ;;  %s1390_s21 = smov 4  }
   0xe   :  { %45 = dma.hbm_to_vmem [thread:$0]  %s1507_s1, 6144, %s40_s18, [#allocation10], %s1389_s20, %s1389_s20, %s1390_s21  }
   0xf   :  { %s1391_s24 = smov [#allocation6]  }
  0x10   :  { %s27_s25 = sshll.u32 %s1391_s24, 4  ;;  %s28_s25 = int_to_ptr.vmem [resolvable:$true] %s27_s25 }
  0x11   :  { %s1308_s26 = scalar_lea.vmem %s28_s25, 768  ;;  %p1313_p6 = scmp.lt.s32.totalorder %s28_s25, %s28_s25 }
  0x12   :  { %p1309_p5 = scmp.ne.s32.totalorder %s28_s25, %s1308_s26  ;;  %p1314_p7 = scmp.lt.s32.totalorder %s1308_s26, %s1308_s26 }
  0x14   :  { %p1315_p8 = por %p1314_p7, %p1313_p6 }
  0x16   :  { %p1316_p9 = pnand %p1315_p8, %p1309_p5 }
  0x18   :  { %1319 = shalt.err (!%p1316_p9)
}
  0x19   :  { %s1392_s27 = smov 384   ;;  %s1393_s28 = smov 24  }
  0x1a   :  { %33 = dma.hbm_to_vmem [thread:$0]  %s1506_s0, 768, %s28_s25, [#allocation7], %s1392_s27, %s1392_s27, %s1393_s28  }
  0x1b   :  { %s1394_s12 = smov [#allocation11]  }
  0x1c   :  { %s53_s13 = sshll.u32 %s1394_s12, 4  ;;  %s54_s13 = int_to_ptr.vmem [resolvable:$true] %s53_s13 }
  0x1d   :  { %s1328_s1 = scalar_lea.vmem %s54_s13, 2048  ;;  %p1333_p11 = scmp.lt.s32.totalorder %s54_s13, %s54_s13 }
  0x1e   :  { %p1329_p10 = scmp.ne.s32.totalorder %s54_s13, %s1328_s1  ;;  %p1334_p12 = scmp.lt.s32.totalorder %s1328_s1, %s1328_s1 }
  0x20   :  { %p1335_p13 = por %p1334_p12, %p1333_p11 }
  0x22   :  { %p1336_p0 = pnand %p1335_p13, %p1329_p10 }
  0x24   :  { %1339 = shalt.err (!%p1336_p0)
}
  0x25   :  { %s1395_s14 = smov 128   ;;  %s1396_s15 = smov 8  }
  0x26   :  { %59 = dma.hbm_to_vmem [thread:$0]  %s1509_s3, 2048, %s54_s13, [#allocation10], %s1395_s14, %s1395_s14, %s1396_s15  }
  0x27   :  { %s1397_s18 = smov [#allocation12]  }
  0x28   :  { %s71_s19 = sshll.u32 %s1397_s18, 4  ;;  %s72_s19 = int_to_ptr.vmem [resolvable:$true] %s71_s19 }
  0x29   :  { %s1348_s0 = scalar_lea.vmem %s72_s19, 4096  ;;  %p1353_p2 = scmp.lt.s32.totalorder %s72_s19, %s72_s19 }
  0x2a   :  { %p1349_p1 = scmp.ne.s32.totalorder %s72_s19, %s1348_s0  ;;  %p1354_p3 = scmp.lt.s32.totalorder %s1348_s0, %s1348_s0 }
  0x2c   :  { %p1355_p4 = por %p1354_p3, %p1353_p2 }
  0x2e   :  { %p1356_p5 = pnand %p1355_p4, %p1349_p1 }
  0x30   :  { %1359 = shalt.err (!%p1356_p5)
}
  0x31   :  { %s1398_s20 = smov 256   ;;  %s1399_s21 = smov 16  }
  0x32   :  { %77 = dma.hbm_to_vmem [thread:$0]  %s1513_s7, 4096, %s72_s19, [#allocation13], %s1398_s20, %s1398_s20, %s1399_s21  }
  0x33   :  { %1380 = dma.done.wait [#allocation7], 768  }
  0x34   :  { %1381 = vsyncadd [#allocation7], 4294966528 }
  0x35   :  { %1382 = dma.done.wait [#allocation10], 8192  }
  0x36   :  { %1383 = vsyncadd [#allocation10], 4294959104 }
  0x37   :  { %1384 = dma.done.wait [#allocation13], 4096  }
  0x38   :  { %1385 = vsyncadd [#allocation13], 4294963200  ;;  %v1203_v0 = vld [vmem:[#allocation9 + $0x78] sm:$0xff]   ;;  %v1207_v4 = vld [vmem:[#allocation9 + $0x70] sm:$0xff]   ;;  %vm890_vm0 = vcmask 1041409   ;;  %vm980_vm1 = vcmask 1041408  }
  0x39   :  { %v1204_v1 = vld [vmem:[#allocation9 + $0xf8] sm:$0xff]   ;;  %1070 = vmatprep.subr.bf16.mxu0 %v1203_v0  ;;  %v1208_v5 = vld [vmem:[#allocation9 + $0xf0] sm:$0xff]   ;;  %v1211_v8 = vld [vmem:[#allocation9 + $0x68] sm:$0xff]  }
  0x3a   :  { %v1205_v2 = vld [vmem:[#allocation9 + $0x38] sm:$0xff]   ;;  %1092 = vmatprep.subr.bf16.mxu1 %v1204_v1  ;;  %v1209_v6 = vld [vmem:[#allocation9 + $0x30] sm:$0xff]   ;;  %v1212_v9 = vld [vmem:[#allocation9 + $0xe8] sm:$0xff]  }
  0x3b   :  { %v1206_v3 = vld [vmem:[#allocation9 + $0xb8] sm:$0xff]   ;;  %1071 = vmatpush3.bf16.msra.mxu0 %v1205_v2  ;;  %v1210_v7 = vld [vmem:[#allocation9 + $0xb0] sm:$0xff]   ;;  %v1213_v10 = vld [vmem:[#allocation9 + $0x28] sm:$0xff]  }
  0x3c   :  { %1093 = vmatpush3.bf16.msra.mxu1 %v1206_v3  ;;  %1072 = vmatprep.subr.bf16.mxu0 %v1207_v4  ;;  %v1214_v11 = vld [vmem:[#allocation9 + $0xa8] sm:$0xff]   ;;  %v1215_v12 = vld [vmem:[#allocation9 + $0x60] sm:$0xff]   ;;  %v1219_v16 = vld [vmem:[#allocation9 + $0x58] sm:$0xff]  }
  0x3d   :  { %1094 = vmatprep.subr.bf16.mxu1 %v1208_v5  ;;  %v1216_v13 = vld [vmem:[#allocation9 + $0xe0] sm:$0xff]   ;;  %v1220_v17 = vld [vmem:[#allocation9 + $0xd8] sm:$0xff]   ;;  %v1223_v20 = vld [vmem:[#allocation9 + $0x50] sm:$0xff]  }
  0x3e   :  { %v1217_v14 = vld [vmem:[#allocation9 + $0x20] sm:$0xff]   ;;  %v1221_v18 = vld [vmem:[#allocation9 + $0x18] sm:$0xff]   ;;  %v1224_v21 = vld [vmem:[#allocation9 + $0xd0] sm:$0xff]  }
  0x3f   :  { %1073 = vmatpush3.bf16.msra.mxu0 %v1209_v6  ;;  %v1218_v15 = vld [vmem:[#allocation9 + $0xa0] sm:$0xff]   ;;  %v1222_v19 = vld [vmem:[#allocation9 + $0x98] sm:$0xff]   ;;  %v1225_v22 = vld [vmem:[#allocation9 + $0x10] sm:$0xff]  }
  0x40   :  { %1095 = vmatpush3.bf16.msra.mxu1 %v1210_v7  ;;  %1074 = vmatprep.subr.bf16.mxu0 %v1211_v8  ;;  %v1226_v23 = vld [vmem:[#allocation9 + $0x90] sm:$0xff]   ;;  %v1227_v24 = vld [vmem:[#allocation9 + $0x48] sm:$0xff]   ;;  %v1231_v28 = vld [vmem:[#allocation9 + $0x40] sm:$0xff]  }
  0x41   :  { %1096 = vmatprep.subr.bf16.mxu1 %v1212_v9  ;;  %v1228_v25 = vld [vmem:[#allocation9 + $0xc8] sm:$0xff]   ;;  %v1232_v29 = vld [vmem:[#allocation9 + $0xc0] sm:$0xff]   ;;  %v1238_v34 = vld [vmem:[#allocation6 + $0x8] ss:$24 sps:$4 sm:$0xff]  }
  0x42   :  { %v1229_v26 = vld [vmem:[#allocation9 + $0x8] sm:$0xff]   ;;  %v1233_v30 = vld [vmem:[#allocation9] sm:$0xff]   ;;  %v1240_v35 = vld [vmem:[#allocation6 + $0xc] ss:$24 sps:$4 sm:$0xff]  }
  0x43   :  { %1075 = vmatpush3.bf16.msra.mxu0 %v1213_v10  ;;  %v1230_v27 = vld [vmem:[#allocation9 + $0x88] sm:$0xff]   ;;  %v1234_v31 = vld [vmem:[#allocation9 + $0x80] sm:$0xff]   ;;  %v1241_v36 = vld [vmem:[#allocation9 + $0x178] sm:$0xff]   ;;  %598 = vmatprep.mubr.bf16.mxu1 %v1240_v35 }
  0x44   :  { %1097 = vmatpush3.bf16.msra.mxu1 %v1214_v11  ;;  %1076 = vmatprep.subr.bf16.mxu0 %v1215_v12  ;;  %v1235_v32 = vld [vmem:[#allocation6] ss:$24 sps:$4 sm:$0xff]   ;;  %v1237_v33 = vld [vmem:[#allocation6 + $0x4] ss:$24 sps:$4 sm:$0xff]   ;;  %v1242_v37 = vld [vmem:[#allocation9 + $0x138] sm:$0xff]  }
  0x45   :  { %1098 = vmatprep.subr.bf16.mxu1 %v1216_v13  ;;  %557 = vmatprep.mubr.bf16.mxu0 %v1237_v33  ;;  %v1243_v38 = vld [vmem:[#allocation9 + $0x170] sm:$0xff]   ;;  %v1245_v40 = vld [vmem:[#allocation9 + $0x168] sm:$0xff]   ;;  %v1247_v42 = vld [vmem:[#allocation9 + $0x160] sm:$0xff]  }
  0x46   :  { %v1244_v39 = vld [vmem:[#allocation9 + $0x130] sm:$0xff]   ;;  %v1246_v41 = vld [vmem:[#allocation9 + $0x128] sm:$0xff]   ;;  %v1248_v43 = vld [vmem:[#allocation9 + $0x120] sm:$0xff]  }
  0x47   :  { %1077 = vmatpush3.bf16.msra.mxu0 %v1217_v14  ;;  %v1249_v44 = vld [vmem:[#allocation9 + $0x158] sm:$0xff]   ;;  %v1251_v46 = vld [vmem:[#allocation9 + $0x150] sm:$0xff]   ;;  %v1253_v49 = vld [vmem:[#allocation9 + $0x148] sm:$0xff]  }
  0x48   :  { %1099 = vmatpush3.bf16.msra.mxu1 %v1218_v15  ;;  %1078 = vmatprep.subr.bf16.mxu0 %v1219_v16  ;;  %v1250_v45 = vld [vmem:[#allocation9 + $0x118] sm:$0xff]   ;;  %v1252_v48 = vld [vmem:[#allocation9 + $0x110] sm:$0xff]   ;;  %v1254_v50 = vld [vmem:[#allocation9 + $0x108] sm:$0xff]  }
  0x49   :  { %1100 = vmatprep.subr.bf16.mxu1 %v1220_v17  ;;  %v1259_v47 = vld [vmem:[#allocation6 + $0x14] ss:$24 sps:$4 sm:$0xff]   ;;  %v1257_v53 = vld [vmem:[#allocation6 + $0x10] ss:$24 sps:$4 sm:$0xff]   ;;  %v693_v55 = vld [vmem:[#allocation11 + $0x70] sm:$0xff] }
  0x4a   :  { %v1255_v51 = vld [vmem:[#allocation9 + $0x140] sm:$0xff]   ;;  %v694_v54 = vld [vmem:[#allocation11 + $0x78] sm:$0xff]  ;;  %v692_v56 = vld [vmem:[#allocation11 + $0x68] sm:$0xff] }
  0x4b   :  { %1079 = vmatpush3.bf16.msra.mxu0 %v1221_v18  ;;  %v1256_v52 = vld [vmem:[#allocation9 + $0x100] sm:$0xff]   ;;  %v690_v58 = vld [vmem:[#allocation11 + $0x58] sm:$0xff]  ;;  %v689_v59 = vld [vmem:[#allocation11 + $0x50] sm:$0xff] }
  0x4c   :  { %1101 = vmatpush3.bf16.msra.mxu1 %v1222_v19  ;;  %1080 = vmatprep.subr.bf16.mxu0 %v1223_v20  ;;  %v691_v57 = vld [vmem:[#allocation11 + $0x60] sm:$0xff]  ;;  %v688_v60 = vld [vmem:[#allocation11 + $0x48] sm:$0xff]  ;;  %v686_v62 = vld [vmem:[#allocation11 + $0x38] sm:$0xff] }
  0x4d   :  { %1102 = vmatprep.subr.bf16.mxu1 %v1224_v21  ;;  %v687_v61 = vld [vmem:[#allocation11 + $0x40] sm:$0xff]  ;;  %v685_v63 = vld [vmem:[#allocation11 + $0x30] sm:$0xff]  ;;  %v684_v0 = vld [vmem:[#allocation11 + $0x28] sm:$0xff] }
  0x4e   :  { %v683_v1 = vld [vmem:[#allocation11 + $0x20] sm:$0xff]  ;;  %v682_v2 = vld [vmem:[#allocation11 + $0x18] sm:$0xff]  ;;  %v681_v3 = vld [vmem:[#allocation11 + $0x10] sm:$0xff] }
  0x4f   :  { %1081 = vmatpush3.bf16.msra.mxu0 %v1225_v22  ;;  %v680_v4 = vld [vmem:[#allocation11 + $0x8] sm:$0xff]  ;;  %v679_v5 = vld [vmem:[#allocation11] sm:$0xff]  ;;  %v1067_v22 = vld [vmem:[%s1508_s2] ss:$0 sm:$0xff] }
  0x50   :  { %1103 = vmatpush3.bf16.msra.mxu1 %v1226_v23  ;;  %1082 = vmatprep.subr.bf16.mxu0 %v1227_v24 }
  0x51   :  { %1104 = vmatprep.subr.bf16.mxu1 %v1228_v25 }
  0x53   :  { %1083 = vmatpush3.bf16.msra.mxu0 %v1229_v26 }
  0x54   :  { %1105 = vmatpush3.bf16.msra.mxu1 %v1230_v27  ;;  %1084 = vmatprep.subr.bf16.mxu0 %v1231_v28 }
  0x55   :  { %1106 = vmatprep.subr.bf16.mxu1 %v1232_v29 }
  0x57   :  { %1085 = vmatpush3.bf16.msra.mxu0 %v1233_v30 }
  0x58   :  { %1107 = vmatpush3.bf16.msra.mxu1 %v1234_v31  ;;  %1114 = vmatprep.subr.bf16.mxu0 %v1241_v36 }
  0x59   :  { %1154 = vmatprep.subr.mxu1 %v694_v54 }
  0x5a   :  { %558 = vmatmul.mubr.bf16.vlgmr.msra.gmra.mxu0 %v1235_v32 }
  0x5b   :  { %599 = vmatmul.mubr.bf16.vlgmr.msra.gmra.mxu1 %v1238_v34  ;;  %1115 = vmatpush3.bf16.msra.mxu0 %v1242_v37  ;;  %v1068_v34 = vld [vmem:[%s1510_s4] ss:$0 sm:$0xff] }
  0x5c   :  { %1116 = vmatprep.subr.bf16.mxu0 %v1243_v38  ;;  %639 = vmatprep.mubr.bf16.mxu0 %v1259_v47  ;;  %v1400_v47 = vmov 0.0  }
  0x5d   :  { %1155 = vmatpush3.msra.mxu1 %v694_v54  ;;  %v865_v54 = vld [vmem:[#allocation12 + $0xa8] sm:$0xff] }
  0x5e   :  { %1156 = vmatprep.subr.mxu1 %v693_v55 }
  0x5f   :  { %1117 = vmatpush3.bf16.msra.mxu0 %v1244_v39  ;;  %1157 = vmatpush3.msra.mxu1 %v693_v55  ;;  %v1069_v39 = vld [vmem:[%s1511_s5] ss:$0 sm:$0xff]  ;;  %v864_v55 = vld [vmem:[#allocation12 + $0xa0] sm:$0xff] }
  0x60   :  { %1118 = vmatprep.subr.bf16.mxu0 %v1245_v40  ;;  %1158 = vmatprep.subr.mxu1 %v692_v56 }
  0x61   :  { %1159 = vmatpush3.msra.mxu1 %v692_v56  ;;  %v863_v56 = vld [vmem:[#allocation12 + $0x98] sm:$0xff] }
  0x62   :  { %1160 = vmatprep.subr.mxu1 %v691_v57 }
  0x63   :  { %1119 = vmatpush3.bf16.msra.mxu0 %v1246_v41  ;;  %1161 = vmatpush3.msra.mxu1 %v691_v57  ;;  %v862_v57 = vld [vmem:[#allocation12 + $0x90] sm:$0xff] }
  0x64   :  { %1120 = vmatprep.subr.bf16.mxu0 %v1247_v42  ;;  %1162 = vmatprep.subr.mxu1 %v690_v58 }
  0x65   :  { %1163 = vmatpush3.msra.mxu1 %v690_v58  ;;  %v861_v58 = vld [vmem:[#allocation12 + $0x88] sm:$0xff] }
  0x66   :  { %1164 = vmatprep.subr.mxu1 %v689_v59 }
  0x67   :  { %1121 = vmatpush3.bf16.msra.mxu0 %v1248_v43  ;;  %1165 = vmatpush3.msra.mxu1 %v689_v59  ;;  %v875_v43 = vld [vmem:[#allocation12 + $0xf8] sm:$0xff]  ;;  %v860_v59 = vld [vmem:[#allocation12 + $0x80] sm:$0xff] }
  0x68   :  { %1122 = vmatprep.subr.bf16.mxu0 %v1249_v44  ;;  %1166 = vmatprep.subr.mxu1 %v688_v60  ;;  %v874_v44 = vld [vmem:[#allocation12 + $0xf0] sm:$0xff] }
  0x69   :  { %1167 = vmatpush3.msra.mxu1 %v688_v60  ;;  %v859_v60 = vld [vmem:[#allocation12 + $0x78] sm:$0xff] }
  0x6a   :  { %1168 = vmatprep.subr.mxu1 %v687_v61 }
  0x6b   :  { %1123 = vmatpush3.bf16.msra.mxu0 %v1250_v45  ;;  %1169 = vmatpush3.msra.mxu1 %v687_v61  ;;  %v873_v45 = vld [vmem:[#allocation12 + $0xe8] sm:$0xff]  ;;  %v858_v61 = vld [vmem:[#allocation12 + $0x70] sm:$0xff] }
  0x6c   :  { %1124 = vmatprep.subr.bf16.mxu0 %v1251_v46  ;;  %1170 = vmatprep.subr.mxu1 %v686_v62  ;;  %v872_v46 = vld [vmem:[#allocation12 + $0xe0] sm:$0xff] }
  0x6d   :  { %1171 = vmatpush3.msra.mxu1 %v686_v62  ;;  %v857_v62 = vld [vmem:[#allocation12 + $0x68] sm:$0xff] }
  0x6e   :  { %1172 = vmatprep.subr.mxu1 %v685_v63 }
  0x6f   :  { %1125 = vmatpush3.bf16.msra.mxu0 %v1252_v48  ;;  %1173 = vmatpush3.msra.mxu1 %v685_v63  ;;  %v871_v48 = vld [vmem:[#allocation12 + $0xd8] sm:$0xff]  ;;  %v856_v63 = vld [vmem:[#allocation12 + $0x60] sm:$0xff] }
  0x70   :  { %1126 = vmatprep.subr.bf16.mxu0 %v1253_v49  ;;  %1174 = vmatprep.subr.mxu1 %v684_v0  ;;  %v870_v49 = vld [vmem:[#allocation12 + $0xd0] sm:$0xff] }
  0x71   :  { %1175 = vmatpush3.msra.mxu1 %v684_v0  ;;  %v855_v0 = vld [vmem:[#allocation12 + $0x58] sm:$0xff] }
  0x72   :  { %1176 = vmatprep.subr.mxu1 %v683_v1 }
  0x73   :  { %1127 = vmatpush3.bf16.msra.mxu0 %v1254_v50  ;;  %1177 = vmatpush3.msra.mxu1 %v683_v1  ;;  %v869_v50 = vld [vmem:[#allocation12 + $0xc8] sm:$0xff]  ;;  %v854_v1 = vld [vmem:[#allocation12 + $0x50] sm:$0xff] }
  0x74   :  { %1128 = vmatprep.subr.bf16.mxu0 %v1255_v51  ;;  %1178 = vmatprep.subr.mxu1 %v682_v2  ;;  %v868_v51 = vld [vmem:[#allocation12 + $0xc0] sm:$0xff] }
  0x75   :  { %1179 = vmatpush3.msra.mxu1 %v682_v2  ;;  %v853_v2 = vld [vmem:[#allocation12 + $0x48] sm:$0xff] }
  0x76   :  { %1180 = vmatprep.subr.mxu1 %v681_v3 }
  0x77   :  { %1129 = vmatpush3.bf16.msra.mxu0 %v1256_v52  ;;  %1181 = vmatpush3.msra.mxu1 %v681_v3  ;;  %v867_v52 = vld [vmem:[#allocation12 + $0xb8] sm:$0xff]  ;;  %v852_v3 = vld [vmem:[#allocation12 + $0x40] sm:$0xff] }
  0x78   :  { %1182 = vmatprep.subr.mxu1 %v680_v4  ;;  %893 = vmatprep.subr.mxu0 %v875_v43 }
  0x79   :  { %1183 = vmatpush3.msra.mxu1 %v680_v4  ;;  %v851_v4 = vld [vmem:[#allocation12 + $0x38] sm:$0xff] }
  0x7a   :  { %640 = vmatmul.mubr.bf16.vlgmr.msra.gmra.mxu0 %v1257_v53  ;;  %1184 = vmatprep.subr.mxu1 %v679_v5  ;;  %v866_v53 = vld [vmem:[#allocation12 + $0xb0] sm:$0xff] }
  0x7b   :  { %1185 = vmatpush3.msra.mxu1 %v679_v5  ;;  %957 = vmatprep.mubr.f32.mxu0 %v1400_v47  ;;  %v850_v5 = vld [vmem:[#allocation12 + $0x30] sm:$0xff] }
  0x7c   :  { %894 = vmatpush1.msra.mxu0 %v874_v44 }
  0x7d   :  { %895 = vmatprep.subr.mxu0 %v873_v45 }
  0x7e   :  { %896 = vmatpush1.msra.mxu0 %v872_v46 }
  0x7f   :  { %897 = vmatprep.subr.mxu0 %v871_v48 }
  0x80   :  { %898 = vmatpush1.msra.mxu0 %v870_v49 }
  0x81   :  { %899 = vmatprep.subr.mxu0 %v869_v50 }
  0x82   :  { %900 = vmatpush1.msra.mxu0 %v868_v51 }
  0x83   :  { %901 = vmatprep.subr.mxu0 %v867_v52 }
  0x84   :  { %902 = vmatpush1.msra.mxu0 %v866_v53 }
  0x85   :  { %903 = vmatprep.subr.mxu0 %v865_v54 }
  0x86   :  { %904 = vmatpush1.msra.mxu0 %v864_v55 }
  0x87   :  { %905 = vmatprep.subr.mxu0 %v863_v56 }
  0x88   :  { %906 = vmatpush1.msra.mxu0 %v862_v57 }
  0x89   :  { %907 = vmatprep.subr.mxu0 %v861_v58 }
  0x8a   :  { %908 = vmatpush1.msra.mxu0 %v860_v59 }
  0x8b   :  { %909 = vmatprep.subr.mxu0 %v859_v60 }
  0x8c   :  { %910 = vmatpush1.msra.mxu0 %v858_v61 }
  0x8d   :  { %911 = vmatprep.subr.mxu0 %v857_v62 }
  0x8e   :  { %912 = vmatpush1.msra.mxu0 %v856_v63 }
  0x8f   :  { %913 = vmatprep.subr.mxu0 %v855_v0 }
  0x90   :  { %914 = vmatpush1.msra.mxu0 %v854_v1 }
  0x91   :  { %915 = vmatprep.subr.mxu0 %v853_v2 }
  0x92   :  { %916 = vmatpush1.msra.mxu0 %v852_v3 }
  0x93   :  { %917 = vmatprep.subr.mxu0 %v851_v4 }
  0x94   :  { %918 = vmatpush1.msra.mxu0 %v850_v5 }
 0x11a   :  { %v1086_v6 = vpop.f32.mrf.mxu0 }
 0x11b   :  { %v1108_v7 = vpop.f32.mrf.mxu1 }
 0x11c   :  { %v1087_v8 = vpop.f32.mrf.mxu0 }
 0x11d   :  { %v1109_v9 = vpop.f32.mrf.mxu1  ;;  %v1088_v13 = vadd.f32 %v1087_v8, %v1086_v6  ;;  %v849_v6 = vld [vmem:[#allocation12 + $0x28] sm:$0xff]  ;;  %v847_v8 = vld [vmem:[#allocation12 + $0x18] sm:$0xff] }
 0x11e   :  { %v1089_v10 = vpop.f32.mrf.mxu0  ;;  %v1110_v14 = vadd.f32 %v1109_v9, %v1108_v7  ;;  %v848_v7 = vld [vmem:[#allocation12 + $0x20] sm:$0xff]  ;;  %919 = vmatprep.subr.mxu0 %v849_v6  ;;  %v846_v9 = vld [vmem:[#allocation12 + $0x10] sm:$0xff] }
 0x11f   :  { %v1111_v11 = vpop.f32.mrf.mxu1  ;;  %920 = vmatpush1.msra.mxu0 %v848_v7 }
 0x120   :  { %v1090_v12 = vpop.f32.mrf.mxu0  ;;  %v601_v18 = vadd.f32 %v1110_v14, %v1088_v13  ;;  %921 = vmatprep.subr.mxu0 %v847_v8  ;;  %v966_v8 = vld [vmem:[%s1515_s9] sm:$0x3]  ;;  %s1401_s9 = smov [#allocation14]  }
 0x121   :  { %v1112_v15 = vpop.f32.mrf.mxu1  ;;  %v1091_v19 = vadd.f32 %v1090_v12, %v1089_v10  ;;  %v845_v10 = vld [vmem:[#allocation12 + $0x8] sm:$0xff]  ;;  %922 = vmatpush1.msra.mxu0 %v846_v9  ;;  %v793_v12 = vstv %s1512_s6  ;;  %s1002_s12 = sshll.u32 %s1401_s9, 4  ;;  %s1003_s12 = int_to_ptr.vmem [resolvable:$true] %s1002_s12 }
 0x122   :  { %v1113_v20 = vadd.f32 %v1112_v15, %v1111_v11  ;;  %v844_v11 = vld [vmem:[#allocation12] sm:$0xff]  ;;  %923 = vmatprep.subr.mxu0 %v845_v10  ;;  %s1360_s13 = scalar_lea.vmem %s1003_s12, 32  ;;  %p1365_p7 = scmp.lt.s32.totalorder %s1003_s12, %s1003_s12 }
 0x123   :  { %924 = vmatpush1.msra.mxu0 %v844_v11  ;;  %p1361_p6 = scmp.ne.s32.totalorder %s1003_s12, %s1360_s13  ;;  %p1366_p8 = scmp.lt.s32.totalorder %s1360_s13, %s1360_s13 }
 0x124   :  { %v604_v26 = vadd.f32 %v1113_v20, %v1091_v19 }
 0x125   :  { %p1367_p9 = por %p1366_p8, %p1365_p7 }
 0x127   :  { %p1368_p10 = pnand %p1367_p9, %p1361_p6 }
 0x13a   :  { %v1130_v16 = vpop.f32.mrf.mxu0 }
 0x13c   :  { %v1131_v17 = vpop.f32.mrf.mxu0 }
 0x13d   :  { %v1132_v21 = vadd.f32 %v1131_v17, %v1130_v16 }
 0x13e   :  { %v1133_v23 = vpop.f32.mrf.mxu0 }
 0x13f   :  { %v642_v24 = vadd.f32 %v1132_v21, %v601_v18 }
 0x140   :  { %v1134_v25 = vpop.f32.mrf.mxu0 }
 0x141   :  { %v665_v27 = vadd.f32 %v1067_v22, %v642_v24  ;;  %v1135_v28 = vadd.f32 %v1134_v25, %v1133_v23 }
 0x143   :  { %1260 = vtanh.f32 %v665_v27  ;;  %v645_v29 = vadd.f32 %v1135_v28, %v604_v26 }
 0x145   :  { %v666_v30 = vadd.f32 %v1067_v22, %v645_v29 }
 0x147   :  { %1262 = vtanh.f32 %v666_v30 }
 0x150   :  { %v1477_v31 = vpop.eup %1260 }
 0x151   :  { %1186 = vmatprep.mubr.f32.mxu1 %v1477_v31 }
 0x154   :  { %v1480_v32 = vpop.eup %1262 }
 0x155   :  { %1187 = vmatmul.mubr.f32.vlgmr.msra.gmra.mxu1 %v1480_v32 }
 0x215   :  { %v1188_v33 = vpop.f32.mrf.mxu1 }
 0x216   :  { %v774_v36 = vadd.f32 %v1188_v33, %v1068_v34 }
 0x217   :  { %v768_v35 = vpop.f32.mrf.mxu1 }
 0x218   :  { %v769_v37 = vadd.f32 %v1068_v34, %v768_v35 }
 0x21a   :  { %1264 = vtanh.f32 %v769_v37 }
 0x21b   :  { %1266 = vtanh.f32 %v774_v36 }
 0x227   :  { %v1265_v38 = vpop.eup %1264 }
 0x228   :  { %v786_v40 = vmul.f32 %v1265_v38, %v1069_v39  ;;  %v1267_v41 = vpop.eup %1266 }
 0x229   :  { %v787_v42 = vmul.f32 %v1267_v41, %v1069_v39 }
 0x22a   :  { %788 = vadd.xlane.f32.xlu0 %v786_v40 }
 0x22e   :  { %790 = vadd.xlane.f32.xlu0 %v787_v42 }
 0x2b3   :  { %v789_v13 = vpop.xlane.xlu0 %788 }
 0x2b4   :  { %v794_v14 = vadd.f32 %v793_v12, %v789_v13 }
 0x2b6   :  { %v796_v15 = vrot.slane %v794_v14, 4 }
 0x2b7   :  { %v791_v16 = vpop.xlane.xlu0 %790 }
 0x2b8   :  { %v797_v17 = vmax.f32 %v794_v14, %v796_v15  ;;  %v795_v18 = vadd.f32 %v793_v12, %v791_v16 }
 0x2ba   :  { %v798_v19 = vrot.slane %v797_v17, 2  ;;  %v802_v20 = vrot.slane %v795_v18, 4 }
 0x2bc   :  { %v799_v21 = vmax.f32 %v797_v17, %v798_v19  ;;  %v803_v22 = vmax.f32 %v795_v18, %v802_v20 }
 0x2be   :  { %v800_v23 = vrot.slane %v799_v21, 1  ;;  %v804_v24 = vrot.slane %v803_v22, 2 }
 0x2c0   :  { %v801_v25 = vmax.f32 %v799_v21, %v800_v23  ;;  %v805_v26 = vmax.f32 %v803_v22, %v804_v24  ;;  %v987_v23 = vstv %s1516_s10 }
 0x2c2   :  { %v808_v27 = vsub.f32 %v794_v14, %v801_v25  ;;  %v806_v28 = vrot.slane %v805_v26, 1 }
 0x2c4   :  { %v810_v29 = vmul.f32 1.442695, %v808_v27  ;;  %v807_v30 = vmax.f32 %v805_v26, %v806_v28 }
 0x2c6   :  { %1268 = vpow2.f32 %v810_v29  ;;  %v809_v33 = vsub.f32 %v795_v18, %v807_v30 }
 0x2c8   :  { %v812_v34 = vmul.f32 1.442695, %v809_v33 }
 0x2ca   :  { %1270 = vpow2.f32 %v812_v34 }
 0x2d3   :  { %v1269_v35 = vpop.eup %1268 }
 0x2d4   :  { %v814_v36 = vrot.slane %v1269_v35, 4 }
 0x2d6   :  { %v815_v37 = vadd.f32 %v1269_v35, %v814_v36 }
 0x2d7   :  { %v1271_v38 = vpop.eup %1270 }
 0x2d8   :  { %v816_v39 = vrot.slane %v815_v37, 2  ;;  %v820_v40 = vrot.slane %v1271_v38, 4 }
 0x2da   :  { %v817_v41 = vadd.f32 %v816_v39, %v815_v37  ;;  %v821_v42 = vadd.f32 %v1271_v38, %v820_v40 }
 0x2dc   :  { %v818_v43 = vrot.slane %v817_v41, 1  ;;  %v822_v44 = vrot.slane %v821_v42, 2 }
 0x2de   :  { %v819_v45 = vadd.f32 %v818_v43, %v817_v41  ;;  %v823_v46 = vadd.f32 %v822_v44, %v821_v42 }
 0x2e0   :  { %v824_v47 = vrot.slane %v823_v46, 1  ;;  %1272 = vrcp.f32 %v819_v45 }
 0x2e2   :  { %v825_v48 = vadd.f32 %v824_v47, %v823_v46 }
 0x2e4   :  { %1274 = vrcp.f32 %v825_v48 }
 0x2ed   :  { %v1273_v49 = vpop.eup %1272 }
 0x2ee   :  { %v828_v50 = vmul.f32 %v1273_v49, %v1269_v35 }
 0x2f0   :  { %v830_v51 = vmul.f32 %v1477_v31, %v828_v50  ;;  %v878_v31 = vlaneseq }
 0x2f1   :  { %v1275_v52 = vpop.eup %1274 }
 0x2f2   :  { %v829_v53 = vmul.f32 %v1275_v52, %v1271_v38  ;;  %v832_v54 = vrot.slane %v830_v51, 4  ;;  %v879_v4 = vshrl.u32 %v878_v31, 7 }
 0x2f4   :  { %v831_v55 = vmul.f32 %v1480_v32, %v829_v53  ;;  %v833_v56 = vadd.f32 %v832_v54, %v830_v51  ;;  %v880_v5 = vsub.s32 0, %v879_v4  ;;  %v876_v32 = vld [vmem:[%s1514_s8] sm:$0x3]  ;;  %v884_v6 = vsub.s32 1, %v879_v4 }
 0x2f6   :  { %v834_v57 = vrot.slane %v833_v56, 2  ;;  %v838_v58 = vrot.slane %v831_v55, 4  ;;  %v881_v7 = vrot.slane %v876_v32, %v880_v5  ;;  %v885_v9 = vrot.slane %v876_v32, %v884_v6 }
 0x2f7   :  { %v971_v12 = vrot.slane %v966_v8, %v880_v5  ;;  %v975_v16 = vrot.slane %v966_v8, %v884_v6 }
 0x2f8   :  { %v835_v59 = vadd.f32 %v834_v57, %v833_v56  ;;  %v839_v60 = vadd.f32 %v838_v58, %v831_v55 }
 0x2fa   :  { %v840_v61 = vrot.slane %v839_v60, 2  ;;  %v836_v62 = vrot.slane %v835_v59, 1 }
 0x2fc   :  { %v841_v63 = vadd.f32 %v840_v61, %v839_v60  ;;  %v837_v1 = vadd.f32 %v836_v62, %v835_v59 }
 0x2fe   :  { %v842_v0 = vrot.slane %v841_v63, 1 }
 0x300   :  { %v843_v2 = vadd.f32 %v842_v0, %v841_v63 }
 0x302   :  { %v891_v3 = vsel %vm890_vm0, %v843_v2, %v837_v1 }
 0x303   :  { %958 = vmatmul.mubr.f32.vlgmr.msra.gmra.mxu0 %v891_v3 }
 0x3c3   :  { %v959_v10 = vpop.f32.mrf.mxu0 }
 0x3c4   :  { %v960_v11 = vadd.f32 %v959_v10, %v881_v7 }
 0x3c5   :  { %v961_v13 = vpop.f32.mrf.mxu0 }
 0x3c6   :  { %v964_v14 = vmax.f32 %v960_v11, 0.0  ;;  %v962_v15 = vadd.f32 %v961_v13, %v885_v9 }
 0x3c8   :  { %v965_v17 = vmax.f32 %v962_v15, 0.0  ;;  %v978_v18 = vmul.f32 %v971_v12, %v964_v14 }
 0x3ca   :  { %v979_v19 = vmul.f32 %v975_v16, %v965_v17  ;;  %v981_v20 = vsel %vm980_vm1, %v978_v18, 0.0 }
 0x3cc   :  { %v982_v21 = vsel %vm980_vm1, %v979_v19, 0.0 }
 0x3cd   :  { %v983_v22 = vadd.f32 %v982_v21, %v981_v20 }
 0x3cf   :  { %984 = vadd.xlane.f32.xlu1 %v983_v22 }
 0x458   :  { %v985_v24 = vpop.xlane.xlu1 %984 }
 0x459   :  { %v988_v25 = vadd.f32 %v987_v23, %v985_v24 }
 0x45b   :  { %v989_v26 = vsub.f32 0.0, %v988_v25 }
 0x45d   :  { %v990_v27 = vmul.f32 1.442695, %v989_v26 }
 0x45f   :  { %1276 = vpow2.f32 %v990_v27 }
 0x46c   :  { %v1277_v28 = vpop.eup %1276 }
 0x46d   :  { %v992_v29 = vadd.f32 1.0, %v1277_v28 }
 0x46f   :  { %1278 = vrcp.f32 %v992_v29 }
 0x47c   :  { %v1279_v30 = vpop.eup %1278 }
 0x47d   :  { %v994_v33 = vmul.f32 10.0, %v1279_v30 }
 0x47f   :  { %995 = vst [vmem:[#allocation14] sm:$0x3] %v994_v33 }
 0x480   :  { %1371 = shalt.err (!%p1368_p10)
}
 0x481   :  { %1005 = dma.vmem_to_hbm [thread:$0]  %s1003_s12, 32, %s1517_s11, [#allocation8]  }
 0x482   :  { %1386 = dma.done.wait [#allocation8], 32  }
 0x483   :  { %1387 = vsyncadd [#allocation8], 4294967264 }
 0x484   :  { %1009 = vsyncpa [#allocation7], 1 }
 0x485   :  { %1010 = vsyncpa [#allocation10], 1 }
 0x486   :  { %1011 = vsyncpa [#allocation13], 1 }
 0x487   :  { %1012 = vsyncpa [#allocation8], 1 }

</bundles_post_ra>
